<compile_context>
chip_gen: v5e
topology: v5e:2x2
jax: 0.10.0
libtpu: 0.0.40
codegen_flags: <defaults>
</compile_context>

<pallas_src>
import math

import jax
import jax.numpy as jnp
from jax.experimental import pallas as pl
from jax.experimental.pallas import tpu as pltpu

CHUNK = 1024                    # fixed 1024-wide slices, matching the PyTorch module
_TARGET_TILE_BYTES = 8 << 20    # ~8 MiB x-block per buffer (dtype-aware row count)
_GRID_TARGET_STEPS = 8          # aim for >=8 grid steps when R permits (2 TCs x >=4)


def _round_down(v, m):
    return (v // m) * m


def _scale_rows_kernel(w_ref, x_ref, o_ref):
    # w_ref: (tile_r, 1) f32 per-row weights (grid-invariant block when possible)
    # x_ref / o_ref: (tile_r, CHUNK) tile of the row-major (B*S, 1024) view of x.
    o_ref[...] = (x_ref[...] * w_ref[...]).astype(o_ref.dtype)


def stack_wise_product(x: jax.Array, params: jax.Array, *, donate: bool = False) -> jax.Array:
    """x: (B, S*1024), params: (S,). Chunk i of every row is scaled by softmax(params)[i].

    Set donate=True only when the caller actually donates x (jit(..., donate_argnums));
    otherwise aliasing would make XLA insert a defensive copy of x — a full extra HBM
    pass on this bandwidth-bound op.
    """
    B, F = x.shape
    S = params.shape[0]
    assert S > 1, "Stack size must be greater than 1"
    assert F == S * CHUNK, f"expected feature dim {S * CHUNK}, got {F}"

    # Parameter preprocessing (glue): softmax over the S stack weights.
    weights = jax.nn.softmax(params.astype(jnp.float32), axis=0)

    R = B * S                          # rows of the (R, CHUNK) view
    x_rows = x.reshape(R, CHUNK)       # row b*S + i == chunk i of batch b (free reshape)
    itemsize = jnp.dtype(x.dtype).itemsize
    row_bytes = CHUNK * itemsize

    # Row granularity: multiple of 8 (sublane tiling).  lcm(S, 8) additionally aligns
    # every block to a chunk boundary so a single constant (tile_r, 1) weight column
    # is correct for every grid step.  For pathologically large S fall back to a
    # per-row (R, 1) weight column so the block never blows the byte budget.
    row_mult = math.lcm(S, 8)
    const_w = row_mult * row_bytes <= _TARGET_TILE_BYTES
    if not const_w:
        row_mult = 8

    # Byte-budgeted, dtype-aware tile size, capped so the grid never collapses to a
    # single step when R permits more (keeps both v7x TCs busy + pipeline overlap).
    rows_for_bytes = max(row_mult, _round_down(_TARGET_TILE_BYTES // row_bytes, row_mult))
    rows_for_grid = max(row_mult, _round_down(pl.cdiv(R, _GRID_TARGET_STEPS), row_mult))
    tile_r = min(rows_for_bytes, rows_for_grid)
    grid = (pl.cdiv(R, tile_r),)

    if const_w:
        # One weight block reused by every grid step (block index never changes).
        w_arr = jnp.tile(weights, tile_r // S).reshape(tile_r, 1)
        w_spec = pl.BlockSpec((tile_r, 1), lambda r: (0, 0))
        w_bytes = tile_r * 4
    else:
        w_arr = jnp.tile(weights, B).reshape(R, 1)
        w_spec = pl.BlockSpec((tile_r, 1), lambda r: (r, 0))
        w_bytes = R * 4

    aliases = {1: 0} if donate else {}

    out_rows = pl.pallas_call(
        _scale_rows_kernel,
        out_shape=jax.ShapeDtypeStruct((R, CHUNK), x.dtype),
        grid=grid,
        in_specs=[
            w_spec,                                           # per-row weights
            pl.BlockSpec((tile_r, CHUNK), lambda r: (r, 0)),  # x row tile
        ],
        out_specs=pl.BlockSpec((tile_r, CHUNK), lambda r: (r, 0)),
        input_output_aliases=aliases,
        compiler_params=pltpu.CompilerParams(
            dimension_semantics=("parallel",),
            vmem_limit_bytes=48 << 20,
        ),
        cost_estimate=pl.CostEstimate(
            flops=B * F,
            transcendentals=0,
            bytes_accessed=2 * B * F * itemsize + w_bytes,
        ),
    )(w_arr, x_rows)

    return out_rows.reshape(B, F)


if __name__ == "__main__":
    stack_size = 4
    batch = 2

    # Deterministic parameter init, matching nn.Parameter(torch.ones(stack_size)).
    params = jnp.ones((stack_size,), dtype=jnp.float32)

    key = jax.random.PRNGKey(0)
    x = jax.random.normal(key, (batch, stack_size * CHUNK), dtype=jnp.float32)

    # Reference (plain JAX) against the PyTorch semantics — computed first since x
    # is not donated here (donate=False -> no aliasing, no defensive copy).
    w = jax.nn.softmax(params, axis=0)
    ref = (x.reshape(batch, stack_size, CHUNK) * w[None, :, None]).reshape(batch, -1)
    ref = jax.block_until_ready(ref)

    out = stack_wise_product(x, params)
    out = jax.block_until_ready(out)

    assert out.shape == x.shape and out.dtype == x.dtype
    assert jnp.allclose(out, ref, atol=1e-6, rtol=1e-6), "mismatch vs reference"

    # TODO(synk): PyTorch mutates x in place; functional JAX returns a new array
    # (pass donate=True under jit with donate_argnums to recover true in-place reuse).

    print("KERNEL_OK")
</pallas_src>

<mosaic_0001>
module attributes {stable_mosaic.version = 11 : i64} {
  func.func @_scale_rows_kernel(%arg0: i32, %arg1: memref<8x1xf32, #tpu.memory_space<vmem>>, %arg2: memref<8x1024xf32, #tpu.memory_space<vmem>>, %arg3: memref<8x1024xf32, #tpu.memory_space<vmem>>) attributes {dimension_semantics = [#tpu.dimension_semantics<parallel>], iteration_bounds = array<i64: 1>, scalar_prefetch = 0 : i64, scratch_operands = 0 : i64, tpu.core_type = #tpu.core_type<tc>, window_params = [{pipeline_mode = #tpu.pipeline_mode<synchronous>, transform_indices = @transform_0, window_bounds = array<i64: 8, 1>}, {transform_indices = @transform_1, window_bounds = array<i64: 8, 1024>}, {transform_indices = @transform_2, window_bounds = array<i64: 8, 1024>}]} {
    %c0 = arith.constant 0 : index
    %c0_0 = arith.constant 0 : index
    %0 = vector.load %arg2[%c0, %c0_0] : memref<8x1024xf32, #tpu.memory_space<vmem>>, vector<8x1024xf32>
    %c0_1 = arith.constant 0 : index
    %c0_2 = arith.constant 0 : index
    %1 = vector.load %arg1[%c0_1, %c0_2] : memref<8x1xf32, #tpu.memory_space<vmem>>, vector<8x1xf32>
    %2 = vector.broadcast %1 : vector<8x1xf32> to vector<8x1024xf32>
    %3 = arith.mulf %0, %2 : vector<8x1024xf32>
    %c0_3 = arith.constant 0 : index
    %c0_4 = arith.constant 0 : index
    %4 = vector.load %arg3[%c0_3, %c0_4] : memref<8x1024xf32, #tpu.memory_space<vmem>>, vector<8x1024xf32>
    tpu.vector_store %arg3[%c0_3, %c0_4], %3 {strides = array<i32>} : memref<8x1024xf32, #tpu.memory_space<vmem>>, vector<8x1024xf32>,
    return
  }
  func.func @transform_0(%arg0: i32) -> (i32, i32) {
    %c0_i32 = arith.constant 0 : i32
    %c0_i32_0 = arith.constant 0 : i32
    %c0_i32_1 = arith.constant 0 : i32
    return %c0_i32, %c0_i32_0 : i32, i32
  }
  func.func @transform_1(%arg0: i32) -> (i32, i32) {
    %c0_i32 = arith.constant 0 : i32
    %c0_i32_0 = arith.constant 0 : i32
    return %arg0, %c0_i32 : i32, i32
  }
  func.func @transform_2(%arg0: i32) -> (i32, i32) {
    %c0_i32 = arith.constant 0 : i32
    %c0_i32_0 = arith.constant 0 : i32
    return %arg0, %c0_i32 : i32, i32
  }
}

</mosaic_0001>

<bundles_post_ra>
// kernel: tpu_custom_call.1
= control target key start
LH: loop header
LB: loop body
LE: loop exit
PB: predicated region body
PF: predicated region fallthrough
CT: control target
= control target key end

     0   :  { %7 = vsyncpa [#allocation3], 0  ;;  %s156_s0 = inlined_call_operand.vmem [shape: f32[8,1], index: 0, kind: input, shape index: {}]   ;;  %s157_s1 = inlined_call_operand.hbm [shape: f32[8,1024], index: 1, kind: input, shape index: {}]   ;;  %s158_s2 = inlined_call_operand.hbm [shape: f32[8,1024], index: 2, kind: output, shape index: {}]  }
   0x1   :  { %8 = vsyncpa [#allocation4], 0  ;;  %s16_s11 = sshll.u32 %s157_s1, 4  ;;  %s129_s12 = smov [#allocation2]   ;;  %s17_s11 = int_to_ptr.hbm [resolvable:$true] %s16_s11 }
   0x2   :  { %s18_s13 = sshll.u32 %s129_s12, 4  ;;  %s19_s13 = int_to_ptr.vmem [resolvable:$true] %s18_s13 }
   0x3   :  { %21 = dma.hbm_to_vmem [thread:$0]  %s17_s11, 1024, %s19_s13, [#allocation3]  }
   0x4   :  { %125 = dma.done.wait [#allocation3], 1024  }
   0x5   :  { %126 = vsyncadd [#allocation3], 4294966272  ;;  %v130_v0 = vmov 0   ;;  %v34_v1 = vld [vmem:[%s156_s0] sm:$0xff]  ;;  %v27_v3 = vld [vmem:[#allocation2 + $0x8] sm:$0xff]  ;;  %s131_s0 = smov [#allocation5]  }
   0x6   :  { %76 = vset.pattern.permute.xlu0 %v130_v0  ;;  %v26_v2 = vld [vmem:[#allocation2] sm:$0xff]  ;;  %v28_v4 = vld [vmem:[#allocation2 + $0x10] sm:$0xff]  ;;  %v29_v5 = vld [vmem:[#allocation2 + $0x18] sm:$0xff]  ;;  %s61_s1 = sshll.u32 %s131_s0, 4  ;;  %s63_s18 = sshll.u32 %s158_s2, 4  ;;  %s62_s1 = int_to_ptr.vmem [resolvable:$true] %s61_s1  ;;  %s64_s18 = int_to_ptr.hbm [resolvable:$true] %s63_s18 }
   0x7   :  { %37 = vperm.xlu0 %76, %v34_v1   ;;  %v30_v7 = vld [vmem:[#allocation2 + $0x20] sm:$0xff]  ;;  %v31_v8 = vld [vmem:[#allocation2 + $0x28] sm:$0xff]  ;;  %v32_v12 = vld [vmem:[#allocation2 + $0x30] sm:$0xff] }
   0x8   :  { %v33_v14 = vld [vmem:[#allocation2 + $0x38] sm:$0xff] }
  0x79   :  { %v38_v6 = vpop.permute.xlu0 %37 }
  0x7a   :  { %v40_v9 = vmul.f32 %v38_v6, %v26_v2  ;;  %v41_v10 = vmul.f32 %v38_v6, %v27_v3  ;;  %v42_v11 = vmul.f32 %v38_v6, %v28_v4  ;;  %v43_v13 = vmul.f32 %v38_v6, %v29_v5 }
  0x7b   :  { %v44_v15 = vmul.f32 %v38_v6, %v30_v7  ;;  %v45_v16 = vmul.f32 %v38_v6, %v31_v8  ;;  %v46_v17 = vmul.f32 %v38_v6, %v32_v12  ;;  %v47_v18 = vmul.f32 %v38_v6, %v33_v14 }
  0x7c   :  { %48 = vst [vmem:[#allocation5] sm:$0xff] %v40_v9 }
  0x7d   :  { %49 = vst [vmem:[#allocation5 + $0x8] sm:$0xff] %v41_v10 }
  0x7e   :  { %50 = vst [vmem:[#allocation5 + $0x10] sm:$0xff] %v42_v11 }
  0x7f   :  { %51 = vst [vmem:[#allocation5 + $0x18] sm:$0xff] %v43_v13 }
  0x80   :  { %52 = vst [vmem:[#allocation5 + $0x20] sm:$0xff] %v44_v15 }
  0x81   :  { %53 = vst [vmem:[#allocation5 + $0x28] sm:$0xff] %v45_v16 }
  0x82   :  { %54 = vst [vmem:[#allocation5 + $0x30] sm:$0xff] %v46_v17 }
  0x83   :  { %55 = vst [vmem:[#allocation5 + $0x38] sm:$0xff] %v47_v18 }
  0x84   :  { %66 = dma.vmem_to_hbm [thread:$0]  %s62_s1, 1024, %s64_s18, [#allocation4]  }
  0x85   :  { %127 = dma.done.wait [#allocation4], 1024  }
  0x86   :  { %128 = vsyncadd [#allocation4], 4294966272 }
  0x87   :  { %71 = vsyncpa [#allocation3], 1 }
  0x88   :  { %72 = vsyncpa [#allocation4], 1 }

</bundles_post_ra>
